<compile_context>
chip_gen: v6e
topology: v6e:2x2x1
jax: 0.10.0
libtpu: 0.0.40
codegen_flags: <defaults>
</compile_context>

<pallas_src>
import math
import functools

import jax
import jax.numpy as jnp
from jax.experimental import pallas as pl
from jax.experimental.pallas import tpu as pltpu


# ---------------------------------------------------------------------------
# Kernels
# ---------------------------------------------------------------------------

def _pe_add_kernel(x_ref, pe_ref, o_ref):
    # eval-mode forward: x + pe  (nn.Dropout is identity in eval).
    # pe block is (1, TC) and broadcasts over the (TR, TC) x block.
    o_ref[...] = (x_ref[...].astype(jnp.float32) + pe_ref[...]).astype(o_ref.dtype)


def _pe_add_dropout_prng_kernel(seed_ref, x_ref, pe_ref, o_ref, *, threshold, inv_keep):
    # training-mode forward on TPU: mask drawn in-kernel, no bits stream from HBM.
    # Independent stream per grid block: seed = (user_seed, col_tile, row_tile).
    pltpu.prng_seed(seed_ref[0], pl.program_id(0), pl.program_id(1))
    bits = pltpu.bitcast(pltpu.prng_random_bits(x_ref.shape), jnp.uint32)
    y = x_ref[...].astype(jnp.float32) + pe_ref[...]
    keep = (bits & jnp.uint32(0x00FFFFFF)) >= jnp.uint32(threshold)
    scale = jnp.where(keep, jnp.float32(inv_keep), jnp.float32(0.0))
    o_ref[...] = (y * scale).astype(o_ref.dtype)


def _pe_add_dropout_bits_kernel(x_ref, pe_ref, bits_ref, o_ref, *, threshold, inv_keep):
    # training-mode fallback (non-TPU backend / interpret mode): uniform bits
    # generated in the wrapper and streamed to the kernel.
    y = x_ref[...].astype(jnp.float32) + pe_ref[...]
    keep = (bits_ref[...] & jnp.uint32(0x00FFFFFF)) >= jnp.uint32(threshold)
    scale = jnp.where(keep, jnp.float32(inv_keep), jnp.float32(0.0))
    o_ref[...] = (y * scale).astype(o_ref.dtype)


# ---------------------------------------------------------------------------
# Tiling heuristics
# ---------------------------------------------------------------------------

_TARGET_BLOCK_BYTES = 2 * 1024 * 1024  # ~2 MiB x block; double-buffered x/out/(bits)
                                       # stay far under the 32 MiB scoped-VMEM
                                       # limit on v5e/v6e/v7x while giving real
                                       # pipelining for large arrays.


def _pick_tiles(batch, cols, bytes_per_elem, target_bytes=_TARGET_BLOCK_BYTES):
    """Pick (row_tile, col_tile) for a (batch, cols) array.

    Prefers the widest lane-dense (multiple-of-128) column tile that fits the
    byte budget, then the largest row tile.  Falls back to full dims when the
    shape is not cleanly tileable (tiny / non-aligned arrays) -- full-extent
    blocks always satisfy the (8, 128) constraint.
    """
    col_opts = ([c for c in range(128, cols + 1, 128) if cols % c == 0]
                if cols % 128 == 0 else [cols])
    row_opts = ([r for r in range(8, batch + 1, 8) if batch % r == 0]
                if batch % 8 == 0 else [batch])
    for tc in reversed(col_opts):
        for tr in reversed(row_opts):
            if tr * tc * bytes_per_elem <= target_bytes:
                return tr, tc
    return row_opts[0], col_opts[0]


# ---------------------------------------------------------------------------
# Module wrapper
# ---------------------------------------------------------------------------

class PositionalEncoding:
    """JAX/Pallas port of the PyTorch PositionalEncoding module."""

    def __init__(self, d_model: int, dropout: float = 0.1, max_len: int = 5000):
        self.d_model = int(d_model)
        self.max_len = int(max_len)
        self.p = float(dropout)

        position = jnp.arange(max_len, dtype=jnp.float32)[:, None]            # (max_len, 1)
        div_term = jnp.exp(
            jnp.arange(0, d_model, 2, dtype=jnp.float32)
            * (-math.log(10000.0) / d_model)
        )                                                                       # (d_model//2,)
        pe = jnp.zeros((max_len, d_model), dtype=jnp.float32)
        pe = pe.at[:, 0::2].set(jnp.sin(position * div_term))
        pe = pe.at[:, 1::2].set(jnp.cos(position * div_term))
        self.pe = pe[None, :, :]                           # (1, max_len, d_model) — torch-style buffer
        self.pe_flat = pe.reshape(1, max_len * d_model)    # lane-dense view consumed by the kernel

    def __call__(self, x: jax.Array, *, training: bool = False,
                 rng: jax.Array | None = None, seed: int = 0) -> jax.Array:
        B, S, D = x.shape
        assert D == self.d_model and S <= self.max_len
        cols = S * D
        x2 = x.reshape(B, cols)                            # free reshape (trailing-dim collapse)

        tr, tc = _pick_tiles(B, cols, x.dtype.itemsize)
        grid = (cols // tc, B // tr)                       # rows innermost -> pe block stays resident

        if cols % 128 == 0:
            pe_in = self.pe_flat                           # window first S*D cols via the BlockSpec
        else:
            pe_in = self.pe_flat[:, :cols]                 # odd lane width: full-extent block

        # Variadic index maps so the same specs work with/without scalar prefetch.
        x_spec = pl.BlockSpec((tr, tc), lambda j, i, *_: (i, j))
        pe_spec = pl.BlockSpec((1, tc), lambda j, i, *_: (0, j))
        out_spec = pl.BlockSpec((tr, tc), lambda j, i, *_: (i, j))
        out_shape = jax.ShapeDtypeStruct((B, cols), x.dtype)
        cparams = pltpu.CompilerParams(
            dimension_semantics=("parallel", "parallel"),
            vmem_limit_bytes=32 * 1024 * 1024,
        )

        # ---- eval / p == 0: plain add --------------------------------------
        if (not training) or self.p == 0.0:
            out2 = pl.pallas_call(
                _pe_add_kernel,
                out_shape=out_shape,
                grid_spec=pltpu.PrefetchScalarGridSpec(
                    num_scalar_prefetch=0,
                    grid=grid,
                    in_specs=[x_spec, pe_spec],
                    out_specs=out_spec,
                ),
                compiler_params=cparams,
            )(x2, pe_in)
            return out2.reshape(B, S, D)

        if self.p >= 1.0:
            return jnp.zeros_like(x)

        threshold = int(round(self.p * (1 << 24)))
        inv_keep = 1.0 / (1.0 - self.p)

        # ---- training on TPU: in-kernel PRNG (no bits stream from HBM) -----
        if jax.default_backend() == "tpu":
            if rng is not None:
                seed_arr = jax.random.randint(
                    rng, (1,), 0, jnp.iinfo(jnp.int32).max, dtype=jnp.int32)
            else:
                seed_arr = jnp.asarray([seed], dtype=jnp.int32)
            out2 = pl.pallas_call(
                functools.partial(_pe_add_dropout_prng_kernel,
                                  threshold=threshold, inv_keep=inv_keep),
                out_shape=out_shape,
                grid_spec=pltpu.PrefetchScalarGridSpec(
                    num_scalar_prefetch=1,            # seed lands in SMEM
                    grid=grid,
                    in_specs=[x_spec, pe_spec],
                    out_specs=out_spec,
                ),
                compiler_params=cparams,
            )(seed_arr, x2, pe_in)
            return out2.reshape(B, S, D)

        # ---- training fallback (non-TPU / interpret): streamed bits --------
        # TODO(synk): this path exists only so the module stays runnable off-TPU;
        # on TPU the PRNG path above is used and this extra HBM stream is avoided.
        if rng is None:
            rng = jax.random.PRNGKey(seed)
        bits = jax.random.bits(rng, (B, cols), dtype=jnp.uint32)
        bits_spec = pl.BlockSpec((tr, tc), lambda j, i, *_: (i, j))
        out2 = pl.pallas_call(
            functools.partial(_pe_add_dropout_bits_kernel,
                              threshold=threshold, inv_keep=inv_keep),
            out_shape=out_shape,
            grid_spec=pltpu.PrefetchScalarGridSpec(
                num_scalar_prefetch=0,
                grid=grid,
                in_specs=[x_spec, pe_spec, bits_spec],
                out_specs=out_spec,
            ),
            compiler_params=cparams,
        )(x2, pe_in, bits)
        return out2.reshape(B, S, D)


# ---------------------------------------------------------------------------
# Demo / self-check
# ---------------------------------------------------------------------------

if __name__ == "__main__":
    B, S, D = 2, 8, 32
    key = jax.random.PRNGKey(0)
    x = jax.random.normal(key, (B, S, D), dtype=jnp.float32)

    mod = PositionalEncoding(d_model=D, dropout=0.1, max_len=5000)

    # eval-mode forward (deterministic), matches PyTorch module.eval()(x)
    out = jax.block_until_ready(mod(x, training=False))
    ref = x + mod.pe[:, :S, :]
    assert out.shape == (B, S, D) and out.dtype == x.dtype
    assert jnp.allclose(out, ref, atol=1e-6, rtol=1e-6)

    # training-mode forward: every element is either dropped (0) or scaled by 1/(1-p)
    out_train = jax.block_until_ready(mod(x, training=True, seed=123))
    scaled = ref / (1.0 - 0.1)
    ok = jnp.isclose(out_train, 0.0, atol=1e-6) | jnp.isclose(out_train, scaled, rtol=1e-5, atol=1e-5)
    assert out_train.shape == (B, S, D)
    assert bool(jnp.all(ok))

    print("KERNEL_OK")
</pallas_src>

<mosaic_0001>
module attributes {stable_mosaic.version = 11 : i64} {
  func.func @_pe_add_kernel(%arg0: i32, %arg1: i32, %arg2: memref<2x256xf32, #tpu.memory_space<vmem>>, %arg3: memref<1x256xf32, #tpu.memory_space<vmem>>, %arg4: memref<2x256xf32, #tpu.memory_space<vmem>>) attributes {dimension_semantics = [#tpu.dimension_semantics<parallel>, #tpu.dimension_semantics<parallel>], iteration_bounds = array<i64: 1, 1>, scalar_prefetch = 0 : i64, scratch_operands = 0 : i64, tpu.core_type = #tpu.core_type<tc>, window_params = [{transform_indices = @transform_0, window_bounds = array<i64: 2, 256>}, {transform_indices = @transform_1, window_bounds = array<i64: 1, 256>}, {transform_indices = @transform_2, window_bounds = array<i64: 2, 256>}]} {
    %c0 = arith.constant 0 : index
    %c0_0 = arith.constant 0 : index
    %0 = vector.load %arg2[%c0, %c0_0] : memref<2x256xf32, #tpu.memory_space<vmem>>, vector<2x256xf32>
    %c0_1 = arith.constant 0 : index
    %c0_2 = arith.constant 0 : index
    %1 = vector.load %arg3[%c0_1, %c0_2] : memref<1x256xf32, #tpu.memory_space<vmem>>, vector<1x256xf32>
    %2 = vector.broadcast %1 : vector<1x256xf32> to vector<2x256xf32>
    %3 = arith.addf %0, %2 : vector<2x256xf32>
    %c0_3 = arith.constant 0 : index
    %c0_4 = arith.constant 0 : index
    %4 = vector.load %arg4[%c0_3, %c0_4] : memref<2x256xf32, #tpu.memory_space<vmem>>, vector<2x256xf32>
    tpu.vector_store %arg4[%c0_3, %c0_4], %3 {strides = array<i32>} : memref<2x256xf32, #tpu.memory_space<vmem>>, vector<2x256xf32>,
    return
  }
  func.func @transform_0(%arg0: i32, %arg1: i32) -> (i32, i32) {
    %c0_i32 = arith.constant 0 : i32
    return %arg1, %arg0 : i32, i32
  }
  func.func @transform_1(%arg0: i32, %arg1: i32) -> (i32, i32) {
    %c0_i32 = arith.constant 0 : i32
    %c0_i32_0 = arith.constant 0 : i32
    return %c0_i32, %arg0 : i32, i32
  }
  func.func @transform_2(%arg0: i32, %arg1: i32) -> (i32, i32) {
    %c0_i32 = arith.constant 0 : i32
    return %arg1, %arg0 : i32, i32
  }
}

</mosaic_0001>

<bundles_post_ra>
// kernel: tpu_custom_call.1
= control target key start
LH: loop header
LB: loop body
LE: loop exit
PB: predicated region body
PF: predicated region fallthrough
CT: control target
= control target key end

     0   :  { %7 = vsyncpa [#allocation3], 0  ;;  %s172_s0 = inlined_call_operand.hbm [shape: f32[2,256], index: 0, kind: input, shape index: {}]   ;;  %s173_s1 = inlined_call_operand.hbm [shape: f32[1,160000], index: 1, kind: input, shape index: {}]   ;;  %s174_s2 = inlined_call_operand.hbm [shape: f32[2,256], index: 2, kind: output, shape index: {}]  }
   0x1   :  { %8 = vsyncpa [#allocation6], 0 }
   0x2   :  { %9 = vsyncpa [#allocation4], 0  ;;  %s144_s9 = smov [#allocation2]   ;;  %s145_s11 = smov [#allocation5]  }
   0x3   :  { %s16_s10 = sshll.u32 %s144_s9, 4  ;;  %s26_s12 = sshll.u32 %s145_s11, 4  ;;  %s17_s10 = int_to_ptr.vmem [resolvable:$true] %s16_s10  ;;  %s27_s12 = int_to_ptr.vmem [resolvable:$true] %s26_s12 }
   0x4   :  { %s86_s13 = scalar_lea.vmem %s17_s10, 64  ;;  %p91_p1 = scmp.lt.s32.totalorder %s17_s10, %s17_s10 }
   0x5   :  { %p87_p0 = scmp.ne.s32.totalorder %s17_s10, %s86_s13  ;;  %p92_p2 = scmp.lt.s32.totalorder %s86_s13, %s86_s13 }
   0x7   :  { %p93_p3 = por %p92_p2, %p91_p1 }
   0x9   :  { %p94_p4 = pnand %p93_p3, %p87_p0 }
   0xb   :  { %97 = shalt.err (!%p94_p4)
}
   0xc   :  { %19 = dma.hbm_to_vmem [thread:$0]  %s172_s0, 64, %s17_s10, [#allocation3]  }
   0xd   :  { %s106_s16 = scalar_lea.vmem %s27_s12, 32  ;;  %p111_p6 = scmp.lt.s32.totalorder %s27_s12, %s27_s12 }
   0xe   :  { %p107_p5 = scmp.ne.s32.totalorder %s27_s12, %s106_s16  ;;  %p112_p7 = scmp.lt.s32.totalorder %s106_s16, %s106_s16 }
  0x10   :  { %p113_p8 = por %p112_p7, %p111_p6 }
  0x12   :  { %p114_p9 = pnand %p113_p8, %p107_p5 }
  0x14   :  { %117 = shalt.err (!%p114_p9)
}
  0x15   :  { %29 = dma.hbm_to_vmem [thread:$0]  %s173_s1, 32, %s27_s12, [#allocation6]  }
  0x16   :  { %138 = dma.done.wait [#allocation3], 64  }
  0x17   :  { %139 = vsyncadd [#allocation3], 4294967232 }
  0x18   :  { %140 = dma.done.wait [#allocation6], 32  }
  0x19   :  { %141 = vsyncadd [#allocation6], 4294967264  ;;  %v39_v0 = vlaneseq  ;;  %v146_v1 = vmov 1983009808   ;;  %v37_v7 = vld [vmem:[#allocation5] sm:$0x3] }
  0x1a   :  { %v49_v2 = vunpack.c.l.s4 %v146_v1  ;;  %v36_v12 = vld [vmem:[#allocation2] sm:$0xf]  ;;  %s147_s0 = smov [#allocation7]  }
  0x1b   :  { %v40_v3 = vshrl.u32 %v39_v0, 7  ;;  %s64_s19 = sshll.u32 %s147_s0, 4  ;;  %s65_s19 = int_to_ptr.vmem [resolvable:$true] %s64_s19 }
  0x1c   :  { %v50_v6 = vunpack.c.0.s8 %v49_v2  ;;  %s118_s1 = scalar_lea.vmem %s65_s19, 64  ;;  %p123_p11 = scmp.lt.s32.totalorder %s65_s19, %s65_s19 }
  0x1d   :  { %v41_v4 = vsub.s32 0, %v40_v3  ;;  %v45_v5 = vsub.s32 1, %v40_v3  ;;  %p119_p10 = scmp.ne.s32.totalorder %s65_s19, %s118_s1  ;;  %p124_p12 = scmp.lt.s32.totalorder %s118_s1, %s118_s1 }
  0x1e   :  { %v53_v10 = vsub.s32 %v50_v6, %v40_v3 }
  0x1f   :  { %v42_v8 = vrot.slane %v37_v7, %v41_v4  ;;  %v46_v9 = vrot.slane %v37_v7, %v45_v5  ;;  %p125_p13 = por %p124_p12, %p123_p11 }
  0x21   :  { %v47_v11 = vcombine.low %v42_v8, %v46_v9  ;;  %p126_p0 = pnand %p125_p13, %p119_p10 }
  0x23   :  { %v54_v13 = vrot.slane %v47_v11, %v53_v10 }
  0x25   :  { %v56_v14 = vadd.f32 %v54_v13, %v36_v12 }
  0x27   :  { %57 = vst [vmem:[#allocation7] sm:$0xf] %v56_v14 }
  0x28   :  { %129 = shalt.err (!%p126_p0)
}
  0x29   :  { %67 = dma.vmem_to_hbm [thread:$0]  %s65_s19, 64, %s174_s2, [#allocation4]  }
  0x2a   :  { %142 = dma.done.wait [#allocation4], 64  }
  0x2b   :  { %143 = vsyncadd [#allocation4], 4294967232 }
  0x2c   :  { %71 = vsyncpa [#allocation3], 1 }
  0x2d   :  { %72 = vsyncpa [#allocation6], 1 }
  0x2e   :  { %73 = vsyncpa [#allocation4], 1 }

</bundles_post_ra>
